<compile_context>
chip_gen: v7x
topology: tpu7x:2x2x1
jax: 0.10.0
libtpu: 0.0.40
codegen_flags: <defaults>
</compile_context>

<pallas_src>
import functools

import jax
import jax.numpy as jnp
from jax import lax
from jax.experimental import pallas as pl
from jax.experimental.pallas import tpu as pltpu

BN_EPS = 1e-5


# ----------------------------------------------------------------------------
# Pass 1: conv tile (MXU, bf16 x bf16 -> f32 accumulate) + per-tile partial
# BatchNorm statistics.  Grid = (n_m_tiles,) over M = N*Ho*Wo (the lane axis).
# No cross-tile state -> the axis is 'parallel' (v7x megacore shards it).
# ----------------------------------------------------------------------------
def _conv_stats_kernel(p_ref, w_ref, conv_ref, sum_ref, ssq_ref):
    # p_ref:    (K, TM)       bf16 im2col patches tile (K = KH*KW*Cin)
    # w_ref:    (Cout, K)     bf16 conv weight (constant index_map: resident)
    # conv_ref: (Cout, TM)    f32 raw conv tile (re-read by pass 2)
    # sum_ref:  (1, Cout, 1)  f32 per-tile partial sum over the M axis
    # ssq_ref:  (1, Cout, 1)  f32 per-tile partial sum of squares
    conv = jnp.dot(w_ref[...], p_ref[...], preferred_element_type=jnp.float32)
    # Raw conv spilled once in f32.  Storing it bf16 would halve this
    # intermediate's HBM bytes at the cost of ~2e-3 abs error after BN; kept
    # f32 so the kernel matches the bf16-operand/f32-accum reference tightly.
    conv_ref[...] = conv
    # Lane-axis (XLU) reductions; the kernel is DMA-bound so these are free.
    sum_ref[...] = jnp.sum(conv, axis=-1, keepdims=True)[None]
    ssq_ref[...] = jnp.sum(conv * conv, axis=-1, keepdims=True)[None]


# ----------------------------------------------------------------------------
# Pass 2: folded BatchNorm (one mul + one add) + ReLU, lane-dense stores.
# The conv intermediate is aliased to the output (in-place scale/shift).
# ----------------------------------------------------------------------------
def _bn_relu_kernel(c_ref, scale_ref, shift_ref, o_ref):
    o_ref[...] = jnp.maximum(c_ref[...] * scale_ref[...] + shift_ref[...], 0.0)


def _pick_tm(m, k, cout, budget_bytes):
    """Largest M-tile that divides M, is lane-aligned and fits the VMEM budget.

    Budget counts the larger pass's working set: double-buffered bf16 patches
    plus double-buffered f32 conv tiles.
    """
    if m % 128 != 0:
        # Lane-dense tiling impossible; fall back to a single (masked) tile.
        return m
    per_m = max(2 * (k * 2) + 2 * (cout * 4),   # pass 1: patches in + conv out
                4 * (cout * 4))                 # pass 2: conv in + y out
    cap = max(128, budget_bytes // per_m)
    tm = min(m, (cap // 128) * 128)
    while m % tm != 0:
        tm -= 128
    return tm


# ----------------------------------------------------------------------------
# Wrapper: layout glue + bf16 im2col in the transposed (K, M) layout + BN fold.
# ----------------------------------------------------------------------------
def contract_forward(x_nchw, w_oihw, b, gamma, beta, *, stride=2, pad=1,
                     tm_override=None):
    # The conv bias is a per-channel constant added before BatchNorm; the BN
    # mean subtraction cancels it exactly, so it never reaches the kernel.
    del b

    N, Cin, H, W = x_nchw.shape
    Cout, _, KH, KW = w_oihw.shape
    Ho = (H + 2 * pad - KH) // stride + 1
    Wo = (W + 2 * pad - KW) // stride + 1
    M = N * Ho * Wo
    K = KH * KW * Cin

    # --- im2col in the transposed (K, M) bf16 layout the kernel consumes ----
    # Cast to bf16 before any data movement (halves every wrapper pass), move
    # Cin outermost with one cheap transpose of the raw input (contiguous HxW
    # chunks), then build the KH*KW tap slices; the stack+reshape needs no
    # further permute.  K ordered (kh, kw, ci); M ordered (n, ho, wo).
    # TODO(synk): build the patches inside the kernel from the non-duplicated
    # padded input (4 stride-parity planes -> 16 shifted matmuls) to remove
    # the remaining ~4x im2col duplication in HBM entirely.
    x_t = jnp.transpose(x_nchw.astype(jnp.bfloat16), (1, 0, 2, 3))  # (Cin,N,H,W)
    x_pad = jnp.pad(x_t, ((0, 0), (0, 0), (pad, pad), (pad, pad)))
    cols = []
    for kh in range(KH):
        for kw in range(KW):
            cols.append(
                x_pad[:, :, kh:kh + stride * Ho:stride, kw:kw + stride * Wo:stride]
            )
    patches_t = jnp.stack(cols, axis=0).reshape(K, M)               # (K, M) bf16

    # Weight (Cout, Cin, KH, KW) -> (Cout, KH*KW*Cin) with matching K ordering.
    w_t = jnp.transpose(w_oihw, (0, 2, 3, 1)).reshape(Cout, K).astype(jnp.bfloat16)

    # --- M-tiling sized from a v7x-safe VMEM budget --------------------------
    TM = tm_override if tm_override is not None else _pick_tm(
        M, K, Cout, budget_bytes=20 * 1024 * 1024)
    n_tiles = M // TM
    vmem_cap = 32 * 1024 * 1024   # explicit: v5e's default scoped limit is 16 MiB

    # --- pass 1: conv + per-tile partial statistics --------------------------
    conv_flat, sum_part, ssq_part = pl.pallas_call(
        _conv_stats_kernel,
        out_shape=(
            jax.ShapeDtypeStruct((Cout, M), jnp.float32),
            jax.ShapeDtypeStruct((n_tiles, Cout, 1), jnp.float32),
            jax.ShapeDtypeStruct((n_tiles, Cout, 1), jnp.float32),
        ),
        grid_spec=pltpu.PrefetchScalarGridSpec(
            num_scalar_prefetch=0,
            grid=(n_tiles,),
            in_specs=[
                pl.BlockSpec((K, TM), lambda i: (0, i)),      # patches tile
                pl.BlockSpec((Cout, K), lambda i: (0, 0)),    # weights, resident
            ],
            out_specs=(
                pl.BlockSpec((Cout, TM), lambda i: (0, i)),   # raw conv tile
                pl.BlockSpec((1, Cout, 1), lambda i: (i, 0, 0)),
                pl.BlockSpec((1, Cout, 1), lambda i: (i, 0, 0)),
            ),
        ),
        compiler_params=pltpu.CompilerParams(
            dimension_semantics=("parallel",),
            vmem_limit_bytes=vmem_cap,
        ),
    )(patches_t, w_t)

    # --- BN fold (Cout-sized, plain JAX between the two calls) ---------------
    # E[x^2] - E[x]^2 over f32 per-tile partials; fine at these sizes.
    # TODO(synk): switch to per-tile (mean, M2) Welford merging if M gets huge.
    inv_m = 1.0 / float(M)
    sum_c = jnp.sum(sum_part, axis=0)                         # (Cout, 1)
    ssq_c = jnp.sum(ssq_part, axis=0)                         # (Cout, 1)
    mean = sum_c * inv_m
    var = jnp.maximum(ssq_c * inv_m - mean * mean, 0.0)       # biased batch var
    scale = gamma.reshape(Cout, 1).astype(jnp.float32) * lax.rsqrt(var + BN_EPS)
    shift = beta.reshape(Cout, 1).astype(jnp.float32) - mean * scale

    # --- pass 2: scale/shift + ReLU, in place over the conv intermediate -----
    out_t = pl.pallas_call(
        _bn_relu_kernel,
        out_shape=jax.ShapeDtypeStruct((Cout, M), jnp.float32),
        grid_spec=pltpu.PrefetchScalarGridSpec(
            num_scalar_prefetch=0,
            grid=(n_tiles,),
            in_specs=[
                pl.BlockSpec((Cout, TM), lambda i: (0, i)),   # conv tile
                pl.BlockSpec((Cout, 1), lambda i: (0, 0)),    # scale, resident
                pl.BlockSpec((Cout, 1), lambda i: (0, 0)),    # shift, resident
            ],
            out_specs=pl.BlockSpec((Cout, TM), lambda i: (0, i)),
        ),
        input_output_aliases={0: 0},                          # reuse conv buffer
        compiler_params=pltpu.CompilerParams(
            dimension_semantics=("parallel",),
            vmem_limit_bytes=vmem_cap,
        ),
    )(conv_flat, scale, shift)

    # (Cout, N*Ho*Wo) -> NCHW.  Kept f32/NCHW to match the module contract;
    # emit bf16 / fuse this transpose into the consumer if it allows it.
    return jnp.transpose(out_t.reshape(Cout, N, Ho, Wo), (1, 0, 2, 3))


# ----------------------------------------------------------------------------
# Pure-JAX reference for verification
# ----------------------------------------------------------------------------
def contract_reference(x_nchw, w_oihw, b, gamma, beta, *, stride=2, pad=1,
                       conv_dtype=jnp.float32):
    conv = lax.conv_general_dilated(
        x_nchw.astype(conv_dtype), w_oihw.astype(conv_dtype),
        window_strides=(stride, stride),
        padding=((pad, pad), (pad, pad)),
        dimension_numbers=("NCHW", "OIHW", "NCHW"),
        preferred_element_type=jnp.float32,
    ) + b.reshape(1, -1, 1, 1)
    mean = jnp.mean(conv, axis=(0, 2, 3), keepdims=True)
    var = jnp.mean((conv - mean) ** 2, axis=(0, 2, 3), keepdims=True)
    x_hat = (conv - mean) * lax.rsqrt(var + BN_EPS)
    y = x_hat * gamma.reshape(1, -1, 1, 1) + beta.reshape(1, -1, 1, 1)
    return jnp.maximum(y, 0.0)


if __name__ == "__main__":
    # Shapes consistent with Contract(input_channel=4, output_channel=8).
    N, Cin, H, W = 2, 4, 16, 16
    Cout, KH, KW = 8, 4, 4

    key = jax.random.PRNGKey(0)
    kx, kw, kb, kg, kbe, kx2 = jax.random.split(key, 6)

    x = jax.random.normal(kx, (N, Cin, H, W), dtype=jnp.float32)

    # Deterministic parameter init (mimics Conv2d fan-in scaling).
    fan_in = Cin * KH * KW
    bound = 1.0 / jnp.sqrt(fan_in)
    w_conv = jax.random.uniform(kw, (Cout, Cin, KH, KW), jnp.float32, -bound, bound)
    b_conv = jax.random.uniform(kb, (Cout,), jnp.float32, -bound, bound)
    gamma = jnp.ones((Cout,), jnp.float32) + 0.01 * jax.random.normal(kg, (Cout,))
    beta = jnp.zeros((Cout,), jnp.float32) + 0.01 * jax.random.normal(kbe, (Cout,))

    fwd = jax.jit(functools.partial(contract_forward, stride=2, pad=1))
    out = jax.block_until_ready(fwd(x, w_conv, b_conv, gamma, beta))
    assert out.shape == (N, Cout, H // 2, W // 2), out.shape

    # Strict check: reference whose conv also uses bf16 operands with f32
    # accumulation (same MXU numerics as the kernel).
    ref_bf16 = contract_reference(x, w_conv, b_conv, gamma, beta,
                                  conv_dtype=jnp.bfloat16)
    err_strict = float(jnp.max(jnp.abs(out - ref_bf16)))
    assert jnp.allclose(out, ref_bf16, atol=2e-3, rtol=2e-3), err_strict

    # Sanity check against the full-f32 forward (bf16 conv operands introduce
    # sub-percent error; BN output is O(1), so 3e-2 is a comfortable bound).
    ref_f32 = contract_reference(x, w_conv, b_conv, gamma, beta,
                                 conv_dtype=jnp.float32)
    err_f32 = float(jnp.max(jnp.abs(out - ref_f32)))
    assert jnp.allclose(out, ref_f32, atol=3e-2, rtol=3e-2), err_f32

    # Multi-tile path: batch 4 -> M = 256, TM forced to 128 -> 2 tiles.
    # Exercises per-tile partial-stat reduction, resident weights across tiles
    # and the aliased in-place pass 2.
    x2 = jax.random.normal(kx2, (4, Cin, H, W), dtype=jnp.float32)
    fwd2 = jax.jit(functools.partial(contract_forward, stride=2, pad=1,
                                     tm_override=128))
    out2 = jax.block_until_ready(fwd2(x2, w_conv, b_conv, gamma, beta))
    ref2 = contract_reference(x2, w_conv, b_conv, gamma, beta,
                              conv_dtype=jnp.bfloat16)
    err2 = float(jnp.max(jnp.abs(out2 - ref2)))
    assert jnp.allclose(out2, ref2, atol=2e-3, rtol=2e-3), err2

    print("KERNEL_OK")
</pallas_src>

<mosaic_0001>
module attributes {stable_mosaic.version = 11 : i64} {
  func.func @_conv_stats_kernel(%arg0: i32, %arg1: memref<64x128xbf16, #tpu.memory_space<vmem>>, %arg2: memref<8x64xbf16, #tpu.memory_space<vmem>>, %arg3: memref<8x128xf32, #tpu.memory_space<vmem>>, %arg4: memref<1x8x1xf32, #tpu.memory_space<vmem>>, %arg5: memref<1x8x1xf32, #tpu.memory_space<vmem>>) attributes {dimension_semantics = [#tpu.dimension_semantics<parallel>], iteration_bounds = array<i64: 1>, scalar_prefetch = 0 : i64, scratch_operands = 0 : i64, tpu.core_type = #tpu.core_type<tc>, window_params = [{transform_indices = @transform_0, window_bounds = array<i64: 64, 128>}, {pipeline_mode = #tpu.pipeline_mode<synchronous>, transform_indices = @transform_1, window_bounds = array<i64: 8, 64>}, {transform_indices = @transform_2, window_bounds = array<i64: 8, 128>}, {transform_indices = @transform_3, window_bounds = array<i64: 1, 8, 1>}, {transform_indices = @transform_4, window_bounds = array<i64: 1, 8, 1>}]} {
    %c0 = arith.constant 0 : index
    %c0_0 = arith.constant 0 : index
    %0 = vector.load %arg2[%c0, %c0_0] : memref<8x64xbf16, #tpu.memory_space<vmem>>, vector<8x64xbf16>
    %c0_1 = arith.constant 0 : index
    %c0_2 = arith.constant 0 : index
    %1 = vector.load %arg1[%c0_1, %c0_2] : memref<64x128xbf16, #tpu.memory_space<vmem>>, vector<64x128xbf16>
    %cst = arith.constant dense<0.000000e+00> : vector<8x128xf32>
    %2 = tpu.matmul %0, %1, %cst {dimension_numbers = #tpu.dot_dimension_numbers<[1], [0], [0], [1], [0, 0, 1, 1], [], []>} : vector<8x64xbf16>, vector<64x128xbf16>, vector<8x128xf32> -> vector<8x128xf32>
    %c0_3 = arith.constant 0 : index
    %c0_4 = arith.constant 0 : index
    %3 = vector.load %arg3[%c0_3, %c0_4] : memref<8x128xf32, #tpu.memory_space<vmem>>, vector<8x128xf32>
    tpu.vector_store %arg3[%c0_3, %c0_4], %2 {strides = array<i32>} : memref<8x128xf32, #tpu.memory_space<vmem>>, vector<8x128xf32>,
    %cst_5 = arith.constant dense<0.000000e+00> : vector<8xf32>
    %4 = vector.multi_reduction <add>, %2, %cst_5 [1] : vector<8x128xf32> to vector<8xf32>
    %5 = vector.shape_cast %4 : vector<8xf32> to vector<8x1xf32>
    %6 = vector.shape_cast %5 : vector<8x1xf32> to vector<1x8x1xf32>
    %c0_6 = arith.constant 0 : index
    %c0_7 = arith.constant 0 : index
    %c0_8 = arith.constant 0 : index
    %7 = vector.load %arg4[%c0_6, %c0_7, %c0_8] : memref<1x8x1xf32, #tpu.memory_space<vmem>>, vector<1x8x1xf32>
    tpu.vector_store %arg4[%c0_6, %c0_7, %c0_8], %6 {strides = array<i32>} : memref<1x8x1xf32, #tpu.memory_space<vmem>>, vector<1x8x1xf32>,
    %8 = arith.mulf %2, %2 : vector<8x128xf32>
    %cst_9 = arith.constant dense<0.000000e+00> : vector<8xf32>
    %9 = vector.multi_reduction <add>, %8, %cst_9 [1] : vector<8x128xf32> to vector<8xf32>
    %10 = vector.shape_cast %9 : vector<8xf32> to vector<8x1xf32>
    %11 = vector.shape_cast %10 : vector<8x1xf32> to vector<1x8x1xf32>
    %c0_10 = arith.constant 0 : index
    %c0_11 = arith.constant 0 : index
    %c0_12 = arith.constant 0 : index
    %12 = vector.load %arg5[%c0_10, %c0_11, %c0_12] : memref<1x8x1xf32, #tpu.memory_space<vmem>>, vector<1x8x1xf32>
    tpu.vector_store %arg5[%c0_10, %c0_11, %c0_12], %11 {strides = array<i32>} : memref<1x8x1xf32, #tpu.memory_space<vmem>>, vector<1x8x1xf32>,
    return
  }
  func.func @transform_0(%arg0: i32) -> (i32, i32) {
    %c0_i32 = arith.constant 0 : i32
    %c0_i32_0 = arith.constant 0 : i32
    return %c0_i32, %arg0 : i32, i32
  }
  func.func @transform_1(%arg0: i32) -> (i32, i32) {
    %c0_i32 = arith.constant 0 : i32
    %c0_i32_0 = arith.constant 0 : i32
    %c0_i32_1 = arith.constant 0 : i32
    return %c0_i32, %c0_i32_0 : i32, i32
  }
  func.func @transform_2(%arg0: i32) -> (i32, i32) {
    %c0_i32 = arith.constant 0 : i32
    %c0_i32_0 = arith.constant 0 : i32
    return %c0_i32, %arg0 : i32, i32
  }
  func.func @transform_3(%arg0: i32) -> (i32, i32, i32) {
    %c0_i32 = arith.constant 0 : i32
    %c0_i32_0 = arith.constant 0 : i32
    %c0_i32_1 = arith.constant 0 : i32
    return %arg0, %c0_i32, %c0_i32_0 : i32, i32, i32
  }
  func.func @transform_4(%arg0: i32) -> (i32, i32, i32) {
    %c0_i32 = arith.constant 0 : i32
    %c0_i32_0 = arith.constant 0 : i32
    %c0_i32_1 = arith.constant 0 : i32
    return %arg0, %c0_i32, %c0_i32_0 : i32, i32, i32
  }
}

module attributes {stable_mosaic.version = 11 : i64} {
  func.func @_bn_relu_kernel(%arg0: i32, %arg1: memref<8x128xf32, #tpu.memory_space<vmem>>, %arg2: memref<8x1xf32, #tpu.memory_space<vmem>>, %arg3: memref<8x1xf32, #tpu.memory_space<vmem>>, %arg4: memref<8x128xf32, #tpu.memory_space<vmem>>) attributes {dimension_semantics = [#tpu.dimension_semantics<parallel>], iteration_bounds = array<i64: 1>, scalar_prefetch = 0 : i64, scratch_operands = 0 : i64, tpu.core_type = #tpu.core_type<tc>, window_params = [{transform_indices = @transform_0, window_bounds = array<i64: 8, 128>}, {pipeline_mode = #tpu.pipeline_mode<synchronous>, transform_indices = @transform_1, window_bounds = array<i64: 8, 1>}, {pipeline_mode = #tpu.pipeline_mode<synchronous>, transform_indices = @transform_2, window_bounds = array<i64: 8, 1>}, {transform_indices = @transform_3, window_bounds = array<i64: 8, 128>}]} {
    %c0 = arith.constant 0 : index
    %c0_0 = arith.constant 0 : index
    %0 = vector.load %arg1[%c0, %c0_0] : memref<8x128xf32, #tpu.memory_space<vmem>>, vector<8x128xf32>
    %c0_1 = arith.constant 0 : index
    %c0_2 = arith.constant 0 : index
    %1 = vector.load %arg2[%c0_1, %c0_2] : memref<8x1xf32, #tpu.memory_space<vmem>>, vector<8x1xf32>
    %2 = vector.broadcast %1 : vector<8x1xf32> to vector<8x128xf32>
    %3 = arith.mulf %0, %2 : vector<8x128xf32>
    %c0_3 = arith.constant 0 : index
    %c0_4 = arith.constant 0 : index
    %4 = vector.load %arg3[%c0_3, %c0_4] : memref<8x1xf32, #tpu.memory_space<vmem>>, vector<8x1xf32>
    %5 = vector.broadcast %4 : vector<8x1xf32> to vector<8x128xf32>
    %6 = arith.addf %3, %5 : vector<8x128xf32>
    %cst = arith.constant 0.000000e+00 : f32
    %7 = vector.broadcast %cst : f32 to vector<8x128xf32>
    %8 = arith.maximumf %6, %7 : vector<8x128xf32>
    %c0_5 = arith.constant 0 : index
    %c0_6 = arith.constant 0 : index
    %9 = vector.load %arg4[%c0_5, %c0_6] : memref<8x128xf32, #tpu.memory_space<vmem>>, vector<8x128xf32>
    tpu.vector_store %arg4[%c0_5, %c0_6], %8 {strides = array<i32>} : memref<8x128xf32, #tpu.memory_space<vmem>>, vector<8x128xf32>,
    return
  }
  func.func @transform_0(%arg0: i32) -> (i32, i32) {
    %c0_i32 = arith.constant 0 : i32
    %c0_i32_0 = arith.constant 0 : i32
    return %c0_i32, %arg0 : i32, i32
  }
  func.func @transform_1(%arg0: i32) -> (i32, i32) {
    %c0_i32 = arith.constant 0 : i32
    %c0_i32_0 = arith.constant 0 : i32
    %c0_i32_1 = arith.constant 0 : i32
    return %c0_i32, %c0_i32_0 : i32, i32
  }
  func.func @transform_2(%arg0: i32) -> (i32, i32) {
    %c0_i32 = arith.constant 0 : i32
    %c0_i32_0 = arith.constant 0 : i32
    %c0_i32_1 = arith.constant 0 : i32
    return %c0_i32, %c0_i32_0 : i32, i32
  }
  func.func @transform_3(%arg0: i32) -> (i32, i32) {
    %c0_i32 = arith.constant 0 : i32
    %c0_i32_0 = arith.constant 0 : i32
    return %c0_i32, %arg0 : i32, i32
  }
}

</mosaic_0001>

<bundles_post_ra>
// kernel: contract_forward.3
= control target key start
LH: loop header
LB: loop body
LE: loop exit
PB: predicated region body
PF: predicated region fallthrough
CT: control target
= control target key end

     0   :  { %v37_v0 = vmov 0   ;;  %s70_s1 = inlined_call_operand.vmem [shape: f32[8,1], index: 1, kind: input, shape index: {}]   ;;  %s71_s2 = inlined_call_operand.vmem [shape: f32[8,1], index: 2, kind: input, shape index: {}]   ;;  %s72_s0 = inlined_call_operand.vmem [shape: f32[8,128], index: 0, kind: input, shape index: {}, may-alias: {0,3}]   ;;  %s73_s3 = inlined_call_operand.vmem [shape: f32[8,128], index: 3, kind: output, shape index: {}, may-alias: {0,3}]  }
   0x1   :  { %36 = vset.pattern.permute.xlu0 %v37_v0  ;;  %v15_v1 = vld [vmem:[%s70_s1] sm:$0xff] }
   0x2   :  { %18 = vperm.xlu0 %36, %v15_v1   ;;  %v22_v2 = vld [vmem:[%s71_s2] sm:$0xff] }
   0x3   :  { %v14_v4 = vld [vmem:[%s72_s0] sm:$0xff] }
   0x6   :  { %25 = vperm.xlu0 %36, %v22_v2  }
  0x81   :  { %v19_v3 = vpop.permute.xlu0 %18 }
  0x82   :  { %v21_v5 = vmul.f32 %v19_v3, %v14_v4 }
  0x85   :  { %v26_v6 = vpop.permute.xlu0 %25 }
  0x86   :  { %v28_v7 = vadd.f32 %v26_v6, %v21_v5 }
  0x88   :  { %v29_v8 = vmax.f32 %v28_v7, 0.0 }
  0x8a   :  { %30 = vst [vmem:[%s73_s3] sm:$0xff] %v29_v8 }

// kernel: contract_forward.2
= control target key start
LH: loop header
LB: loop body
LE: loop exit
PB: predicated region body
PF: predicated region fallthrough
CT: control target
= control target key end

     0   :  { %v141_v0 = vmov 0.0   ;;  %vm142_vm0 = vmmov 0   ;;  %vm48_vm1 = vcmask 523264   ;;  %vm95_vm2 = vcmask 7168   ;;  %s192_s0 = inlined_call_operand.vmem [shape: bf16[64,128], index: 0, kind: input, shape index: {}]   ;;  %s193_s1 = inlined_call_operand.vmem [shape: bf16[8,64], index: 1, kind: input, shape index: {}]   ;;  %s194_s2 = inlined_call_operand.vmem [shape: f32[8,128], index: 2, kind: output, shape index: {0}]   ;;  %s195_s3 = inlined_call_operand.vmem [shape: f32[1,8,1], index: 3, kind: output, shape index: {1}]   ;;  %s196_s4 = inlined_call_operand.vmem [shape: f32[1,8,1], index: 4, kind: output, shape index: {2}]  }
   0x1   :  { %123 = vmatprep.subr.bf16.mxu0 %v141_v0  ;;  %v137_v1 = vld [vmem:[%s192_s0] sm:$0xff]   ;;  %131 = vmatprep.mubr.msk.bf16.mxu0 %vm142_vm0, %v141_v0  ;;  %v138_v2 = vld [vmem:[%s192_s0 + $0x8] sm:$0xff]   ;;  %v139_v3 = vld [vmem:[%s192_s0 + $0x10] sm:$0xff]  }
   0x2   :  { %124 = vmatpush3.bf16.msra.mxu0 %v137_v1  ;;  %v140_v4 = vld [vmem:[%s192_s0 + $0x18] sm:$0xff]   ;;  %v15_v5 = vld [vmem:[%s193_s1] sm:$0xf] }
   0x3   :  { %125 = vmatprep.subr.bf16.mxu0 %v141_v0 }
   0x6   :  { %126 = vmatpush3.bf16.msra.mxu0 %v138_v2 }
   0x7   :  { %127 = vmatprep.subr.bf16.mxu0 %v141_v0 }
   0xa   :  { %128 = vmatpush3.bf16.msra.mxu0 %v139_v3 }
   0xb   :  { %129 = vmatprep.subr.bf16.mxu0 %v141_v0 }
   0xe   :  { %130 = vmatpush3.bf16.msra.mxu0 %v140_v4 }
  0x11   :  { %132 = vmatmul.mubr.msk.bf16.vlgmr.msra.gmra.mrb[0].mxu0 %vm48_vm1, %v15_v5 }
  0xe4   :  { %v86_v6 = vpop.f32.mrb[0].mxu0 }
  0xe5   :  { %92 = vst [vmem:[%s194_s2] sm:$0xff] %v86_v6  ;;  %93 = vadd.xlane.f32.xlu0 %v86_v6  ;;  %v133_v7 = vpop.f32.mrb[1].mxu0  ;;  %v97_v10 = vmul.f32 %v86_v6, %v86_v6 }
  0xe6   :  { %v89_v8 = vpop.f32.mrb[2].mxu0 }
  0xe7   :  { %v134_v9 = vpop.f32.mrb[3].mxu0 }
  0xe9   :  { %98 = vadd.xlane.f32.xlu0 %v97_v10 }
 0x172   :  { %v94_v11 = vpop.xlane.xlu0 %93 }
 0x173   :  { %96 = vst.msk [vmem:[%s195_s3] sm:$0xff] %vm95_vm2, %v94_v11 }
 0x176   :  { %v99_v12 = vpop.xlane.xlu0 %98 }
 0x177   :  { %100 = vst.msk [vmem:[%s196_s4] sm:$0xff] %vm95_vm2, %v99_v12 }

</bundles_post_ra>
